<compile_context>
chip_gen: v6e
topology: v6e:2x2x1
jax: 0.10.0
libtpu: 0.0.40
codegen_flags: <defaults>
</compile_context>

<pallas_src>
import math

import jax
import jax.numpy as jnp
from jax.experimental import pallas as pl
from jax.experimental.pallas import tpu as pltpu


def swiglu_kernel(x_ref, w_ref, o_ref):
    """One (tm, tn) output tile of u * silu(v), where [u | v] = x @ W_tile."""
    tn = o_ref.shape[-1]
    s = jnp.dot(x_ref[...], w_ref[...],
                preferred_element_type=jnp.float32)        # (tm, 2*tn), f32
    u = s[:, :tn]
    v = s[:, tn:]
    o_ref[...] = (u * (v * jax.nn.sigmoid(v))).astype(o_ref.dtype)


def _round_up(x, m):
    return (x + m - 1) // m * m


_VMEM_HEADROOM = 4 << 20   # compiler scratch / semaphores


def _vmem_budget_bytes():
    """~81% of this device's VMEM: ~52 MiB on v7x (64 MiB/TC), ~104 MiB on
    v5e/v6e (128 MiB).  Conservative 64 MiB fallback if the query fails."""
    try:
        cap = int(pltpu.get_tpu_info().vmem_capacity_bytes)
    except Exception:
        cap = 64 << 20
    return cap * 13 // 16


def _vmem_needed(dim, tn, tm, x_itemsize, w_itemsize):
    # Weight block single-buffered (pl.Buffered(1)); x / out tiles double-buffered.
    return (dim * 2 * tn * w_itemsize
            + 2 * tm * dim * x_itemsize
            + 2 * tm * tn * x_itemsize
            + _VMEM_HEADROOM)


def _select_col_tile(dim, x_itemsize, w_itemsize, tm, budget):
    """Largest output-column tile that fits the VMEM budget."""
    if _vmem_needed(dim, dim, tm, x_itemsize, w_itemsize) <= budget:
        return dim                     # fully resident weights: x read exactly once
    # Column-tiled: prefer multiples of 256 (v6e/v7x MXU is 2x256^2; a 128-wide
    # RHS halves its N utilization), fall back to 128 multiples (fine on v5e).
    for gran in (256, 128):
        best = 0
        t = gran
        while t < dim:
            if dim % t == 0 and _vmem_needed(dim, t, tm, x_itemsize, w_itemsize) <= budget:
                best = t
            t += gran
        if best:
            return best
    return dim   # nothing fits; let the compiler surface the VMEM problem


def prepare_swiglu_weight(weight, *, x_dtype=None, tm=256):
    """Convert the nn.Linear(dim, 2*dim) weight (shape (2*dim, dim)) into a
    fused, pre-transposed RHS of shape (dim, 2*dim) plus its column tile `tn`.

    Columns are arranged per output tile as [U_0 | V_0 | U_1 | V_1 | ...] with
    tile width tn, so each grid step DMAs one contiguous (dim, 2*tn) block and
    the kernel runs a single matmul.  Call ONCE at parameter-load time and pass
    the returned tn (and the same tm) to swiglu()."""
    two_dim, dim = weight.shape
    assert two_dim == 2 * dim, "expected nn.Linear(dim, 2*dim) weight"
    if x_dtype is None:
        x_dtype = weight.dtype
    x_itemsize = jnp.dtype(x_dtype).itemsize
    w_itemsize = jnp.dtype(weight.dtype).itemsize
    sublane = 8 * (4 // x_itemsize)
    tm = max(sublane, _round_up(tm, sublane))
    tn = _select_col_tile(dim, x_itemsize, w_itemsize, tm, _vmem_budget_bytes())

    wu = weight[:dim].T        # (dim, dim): value ("input") projection
    wv = weight[dim:].T        # (dim, dim): gate projection
    nct = dim // tn
    w_fused = jnp.stack(
        [wu.reshape(dim, nct, tn), wv.reshape(dim, nct, tn)], axis=2
    ).reshape(dim, 2 * dim)
    return w_fused, tn


def swiglu(x, w_fused, tn, *, tm=256):
    """x: (..., dim).  (w_fused, tn) from prepare_swiglu_weight (same tm)."""
    dim = x.shape[-1]
    assert w_fused.shape == (dim, 2 * dim)
    assert dim % tn == 0 and (tn == dim or tn % 128 == 0)

    lead_shape = x.shape[:-1]
    xf = x.reshape(-1, dim)
    n = xf.shape[0]

    x_itemsize = jnp.dtype(x.dtype).itemsize
    w_itemsize = jnp.dtype(w_fused.dtype).itemsize

    # Sublane minimum: 8 rows for f32, 16 for bf16, 32 for int8.
    sublane = 8 * (4 // x_itemsize)
    tm = max(sublane, _round_up(tm, sublane))
    if n > sublane:
        # Keep >= 2 row tiles whenever n allows so both v7x TensorCores get work.
        tm = min(tm, _round_up(pl.cdiv(n, 2), sublane))
    tm = min(tm, _round_up(n, sublane))        # don't over-tile tiny inputs

    n_row_tiles = pl.cdiv(n, tm)               # ragged last tile masked by Pallas
    n_col_tiles = dim // tn

    budget = _vmem_budget_bytes()
    needed = _vmem_needed(dim, tn, tm, x_itemsize, w_itemsize)
    assert needed <= budget, (
        f"SwiGLU tiling needs {needed >> 20} MiB VMEM > budget {budget >> 20} MiB; "
        f"re-run prepare_swiglu_weight with a smaller tm")

    rows_eff = n_row_tiles * tm
    cost = pl.CostEstimate(
        flops=4 * rows_eff * dim * dim,                 # (rows, dim) x (dim, 2*dim)
        transcendentals=rows_eff * dim,                 # one exp per sigmoid element
        bytes_accessed=(n_col_tiles * n * dim * x_itemsize   # x, re-read per col tile
                        + 2 * dim * dim * w_itemsize          # fused weights, once
                        + n * dim * x_itemsize),              # output
    )

    # Column tiles OUTER, row tiles INNER: the (single-buffered) weight block
    # only changes on the outer axis, so it stays resident across the row sweep.
    x_spec = pl.BlockSpec((tm, dim), lambda j, i: (i, 0))
    out_spec = pl.BlockSpec((tm, tn), lambda j, i: (i, j))

    def _call(w_spec):
        return pl.pallas_call(
            swiglu_kernel,
            out_shape=jax.ShapeDtypeStruct((n, dim), x.dtype),
            grid_spec=pltpu.PrefetchScalarGridSpec(
                num_scalar_prefetch=0,
                grid=(n_col_tiles, n_row_tiles),
                in_specs=[x_spec, w_spec],
                out_specs=out_spec,
            ),
            compiler_params=pltpu.CompilerParams(
                dimension_semantics=("parallel", "parallel"),
                vmem_limit_bytes=budget,
            ),
            cost_estimate=cost,
        )(xf, w_fused)

    try:
        # Weight block changes at most once per outer column step (never when
        # tn == dim): a single VMEM buffer suffices and halves weight VMEM.
        out = _call(pl.BlockSpec((dim, 2 * tn), lambda j, i: (0, j),
                                 pipeline_mode=pl.Buffered(1)))
    except Exception:
        # Fallback for jax versions without per-BlockSpec pipeline_mode.
        out = _call(pl.BlockSpec((dim, 2 * tn), lambda j, i: (0, j)))

    return out.reshape(*lead_shape, dim)


if __name__ == "__main__":
    batch, seq, dim = 2, 8, 128

    key = jax.random.PRNGKey(0)
    kx, kw = jax.random.split(key)

    # Deterministic init mimicking nn.Linear default: U(-1/sqrt(dim), 1/sqrt(dim)).
    bound = 1.0 / math.sqrt(dim)
    weight = jax.random.uniform(
        kw, (2 * dim, dim), dtype=jnp.float32, minval=-bound, maxval=bound
    )
    x = jax.random.normal(kx, (batch, seq, dim), dtype=jnp.float32)

    # One-time weight prep (would live at parameter-load time in a real model).
    w_fused, tn = prepare_swiglu_weight(weight)
    w_fused = jax.block_until_ready(w_fused)

    out = jax.block_until_ready(swiglu(x, w_fused, tn))

    # Cross-check against a plain-JAX reference of the PyTorch semantics.
    proj = x @ weight.T                          # (..., 2*dim)
    u_ref, v_ref = proj[..., :dim], proj[..., dim:]
    ref = u_ref * (v_ref * jax.nn.sigmoid(v_ref))
    assert out.shape == (batch, seq, dim)
    assert jnp.allclose(out, ref, atol=2e-5, rtol=2e-5), \
        float(jnp.max(jnp.abs(out - ref)))

    print("KERNEL_OK")
</pallas_src>

<mosaic_0001>
module attributes {stable_mosaic.version = 11 : i64} {
  func.func @swiglu_kernel(%arg0: i32, %arg1: i32, %arg2: memref<8x128xf32, #tpu.memory_space<vmem>>, %arg3: memref<128x256xf32, #tpu.memory_space<vmem>>, %arg4: memref<8x128xf32, #tpu.memory_space<vmem>>) attributes {dimension_semantics = [#tpu.dimension_semantics<parallel>, #tpu.dimension_semantics<parallel>], iteration_bounds = array<i64: 1, 2>, scalar_prefetch = 0 : i64, scratch_operands = 0 : i64, tpu.core_type = #tpu.core_type<tc>, window_params = [{transform_indices = @transform_0, window_bounds = array<i64: 8, 128>}, {pipeline_mode = #tpu.pipeline_mode<synchronous>, transform_indices = @transform_1, window_bounds = array<i64: 128, 256>}, {transform_indices = @transform_2, window_bounds = array<i64: 8, 128>}]} {
    %c0 = arith.constant 0 : index
    %c0_0 = arith.constant 0 : index
    %0 = vector.load %arg2[%c0, %c0_0] : memref<8x128xf32, #tpu.memory_space<vmem>>, vector<8x128xf32>
    %c0_1 = arith.constant 0 : index
    %c0_2 = arith.constant 0 : index
    %1 = vector.load %arg3[%c0_1, %c0_2] : memref<128x256xf32, #tpu.memory_space<vmem>>, vector<128x256xf32>
    %cst = arith.constant dense<0.000000e+00> : vector<8x256xf32>
    %2 = tpu.matmul %0, %1, %cst {dimension_numbers = #tpu.dot_dimension_numbers<[1], [0], [0], [1], [0, 0, 1, 1], [], []>} : vector<8x128xf32>, vector<128x256xf32>, vector<8x256xf32> -> vector<8x256xf32>
    %3 = vector.extract_strided_slice %2 {offsets = [0, 0], sizes = [8, 128], strides = [1, 1]} : vector<8x256xf32> to vector<8x128xf32>
    %4 = vector.extract_strided_slice %2 {offsets = [0, 128], sizes = [8, 128], strides = [1, 1]} : vector<8x256xf32> to vector<8x128xf32>
    %5 = arith.negf %4 : vector<8x128xf32>
    %6 = math.exp %5 : vector<8x128xf32>
    %cst_3 = arith.constant 1.000000e+00 : f32
    %7 = vector.broadcast %cst_3 : f32 to vector<8x128xf32>
    %8 = arith.addf %7, %6 : vector<8x128xf32>
    %9 = arith.divf %7, %8 : vector<8x128xf32>
    %10 = arith.mulf %4, %9 : vector<8x128xf32>
    %11 = arith.mulf %3, %10 : vector<8x128xf32>
    %c0_4 = arith.constant 0 : index
    %c0_5 = arith.constant 0 : index
    %12 = vector.load %arg4[%c0_4, %c0_5] : memref<8x128xf32, #tpu.memory_space<vmem>>, vector<8x128xf32>
    tpu.vector_store %arg4[%c0_4, %c0_5], %11 {strides = array<i32>} : memref<8x128xf32, #tpu.memory_space<vmem>>, vector<8x128xf32>,
    return
  }
  func.func @transform_0(%arg0: i32, %arg1: i32) -> (i32, i32) {
    %c0_i32 = arith.constant 0 : i32
    %c0_i32_0 = arith.constant 0 : i32
    return %arg1, %c0_i32 : i32, i32
  }
  func.func @transform_1(%arg0: i32, %arg1: i32) -> (i32, i32) {
    %c0_i32 = arith.constant 0 : i32
    %c0_i32_0 = arith.constant 0 : i32
    return %c0_i32, %arg0 : i32, i32
  }
  func.func @transform_2(%arg0: i32, %arg1: i32) -> (i32, i32) {
    %c0_i32 = arith.constant 0 : i32
    return %arg1, %arg0 : i32, i32
  }
}

module attributes {stable_mosaic.version = 11 : i64} {
  func.func @swiglu_kernel(%arg0: i32, %arg1: i32, %arg2: memref<8x128xf32, #tpu.memory_space<vmem>>, %arg3: memref<128x256xf32, #tpu.memory_space<vmem>>, %arg4: memref<8x128xf32, #tpu.memory_space<vmem>>) attributes {dimension_semantics = [#tpu.dimension_semantics<parallel>, #tpu.dimension_semantics<parallel>], iteration_bounds = array<i64: 1, 2>, scalar_prefetch = 0 : i64, scratch_operands = 0 : i64, tpu.core_type = #tpu.core_type<tc>, window_params = [{transform_indices = @transform_0, window_bounds = array<i64: 8, 128>}, {transform_indices = @transform_1, window_bounds = array<i64: 128, 256>}, {transform_indices = @transform_2, window_bounds = array<i64: 8, 128>}]} {
    %c0 = arith.constant 0 : index
    %c0_0 = arith.constant 0 : index
    %0 = vector.load %arg2[%c0, %c0_0] : memref<8x128xf32, #tpu.memory_space<vmem>>, vector<8x128xf32>
    %c0_1 = arith.constant 0 : index
    %c0_2 = arith.constant 0 : index
    %1 = vector.load %arg3[%c0_1, %c0_2] : memref<128x256xf32, #tpu.memory_space<vmem>>, vector<128x256xf32>
    %cst = arith.constant dense<0.000000e+00> : vector<8x256xf32>
    %2 = tpu.matmul %0, %1, %cst {dimension_numbers = #tpu.dot_dimension_numbers<[1], [0], [0], [1], [0, 0, 1, 1], [], []>} : vector<8x128xf32>, vector<128x256xf32>, vector<8x256xf32> -> vector<8x256xf32>
    %3 = vector.extract_strided_slice %2 {offsets = [0, 0], sizes = [8, 128], strides = [1, 1]} : vector<8x256xf32> to vector<8x128xf32>
    %4 = vector.extract_strided_slice %2 {offsets = [0, 128], sizes = [8, 128], strides = [1, 1]} : vector<8x256xf32> to vector<8x128xf32>
    %5 = arith.negf %4 : vector<8x128xf32>
    %6 = math.exp %5 : vector<8x128xf32>
    %cst_3 = arith.constant 1.000000e+00 : f32
    %7 = vector.broadcast %cst_3 : f32 to vector<8x128xf32>
    %8 = arith.addf %7, %6 : vector<8x128xf32>
    %9 = arith.divf %7, %8 : vector<8x128xf32>
    %10 = arith.mulf %4, %9 : vector<8x128xf32>
    %11 = arith.mulf %3, %10 : vector<8x128xf32>
    %c0_4 = arith.constant 0 : index
    %c0_5 = arith.constant 0 : index
    %12 = vector.load %arg4[%c0_4, %c0_5] : memref<8x128xf32, #tpu.memory_space<vmem>>, vector<8x128xf32>
    tpu.vector_store %arg4[%c0_4, %c0_5], %11 {strides = array<i32>} : memref<8x128xf32, #tpu.memory_space<vmem>>, vector<8x128xf32>,
    return
  }
  func.func @transform_0(%arg0: i32, %arg1: i32) -> (i32, i32) {
    %c0_i32 = arith.constant 0 : i32
    %c0_i32_0 = arith.constant 0 : i32
    return %arg1, %c0_i32 : i32, i32
  }
  func.func @transform_1(%arg0: i32, %arg1: i32) -> (i32, i32) {
    %c0_i32 = arith.constant 0 : i32
    %c0_i32_0 = arith.constant 0 : i32
    return %c0_i32, %arg0 : i32, i32
  }
  func.func @transform_2(%arg0: i32, %arg1: i32) -> (i32, i32) {
    %c0_i32 = arith.constant 0 : i32
    return %arg1, %arg0 : i32, i32
  }
}

</mosaic_0001>

<bundles_post_ra>
// kernel: tpu_custom_call.1
= control target key start
LH: loop header
LB: loop body
LE: loop exit
PB: predicated region body
PF: predicated region fallthrough
CT: control target
= control target key end

     0   :  { %7 = vsyncpa [#allocation3], 0  ;;  %s847_s0 = inlined_call_operand.hbm [shape: f32[16,128], index: 0, kind: input, shape index: {}]   ;;  %s848_s1 = inlined_call_operand.hbm [shape: f32[128,256], index: 1, kind: input, shape index: {}]   ;;  %s849_s2 = inlined_call_operand.hbm [shape: f32[16,128], index: 2, kind: output, shape index: {}]  }
   0x1   :  { %9 = vsyncpa [#allocation3 + $0x1], 0 }
   0x2   :  { %10 = vsyncpa [#allocation6], 0 }
   0x3   :  { %11 = vsyncpa [#allocation4], 0 }
   0x4   :  { %13 = vsyncpa [#allocation4 + $0x1], 0  ;;  %s673_s9 = smov 0   ;;  %s675_s10 = smov 0  }
   0x5   :  { %s677_s11 = smov 0   ;;  %s679_s12 = smov 0  }
   0x6   :  { %s681_s13 = smov 0   ;;  %s683_s14 = smov 0  }
   0x7 LB: > { %s416_s15 = sadd.s32 4294967295, %s650_s14   ;;  %s417_s16 = sadd.s32 4294967294, %s650_s14   ;;  %s650_s14 = sphi %s683_s14, %s19_s14   ;;  %s646_s13 = sphi %s681_s13, %s867_s13   ;;  %s642_s12 = sphi %s679_s12, %s866_s12   ;;  %s638_s11 = sphi %s677_s11, %s865_s11   ;;  %s634_s10 = sphi %s675_s10, %s864_s10   ;;  %s630_s9 = sphi %s673_s9, %s863_s9  }
   0x8   : > { %p51_p0 = scmp.ne.s32.totalorder %s634_s10, %s630_s9  ;;  %p707_p1 = scmp.eq.s32.totalorder %s416_s15, 0 }
   0x9   : > { %p711_p2 = scmp.eq.s32.totalorder %s416_s15, 1  ;;  %p109_p3 = scmp.eq.s32.totalorder %s417_s16, 1 }
   0xa   : > { %p717_p4 = por %p707_p1, %p51_p0  ;;  %p418_p5 = scmp.ge.s32.totalorder %s650_s14, 1 }
   0xb   : > { %p722_p6 = por %p109_p3, %p51_p0  ;;  %p116_p7 = scmp.lt.s32.totalorder %s650_s14, 3 }
   0xc   : > { %s853_s19 = scalar_select %p717_p4, 1, 0 }
   0xd   : > { %s854_s20 = scalar_select %p722_p6, 1, 0 }
   0xe   : > { %p727_p8 = pnand %p418_p5, %p116_p7  ;;  %s652_s22 = smov [#allocation5]  }
   0xf   : > { %s131_s23 = sshll.u32 %s652_s22, 4  ;;  %s28_s25 = sadd.s32 1, %s646_s13  ;;  %s132_s23 = int_to_ptr.vmem [resolvable:$true] %s131_s23 }
  0x10   : > { %p440_p9 = pneg %p727_p8  ;;  %s523_s26 = scalar_lea.vmem %s132_s23, 4096 }
  0x11   : > { %p524_p13 = scmp.ne.s32.totalorder %s132_s23, %s523_s26  ;;  %p531_p5 = scmp.lt.s32.totalorder %s132_s23, %s132_s23 }
  0x12   : > { %p736_p11 = pnand %p440_p9, %p707_p1  ;;  %p532_p7 = scmp.lt.s32.totalorder %s523_s26, %s523_s26 }
  0x14   : > { %p514_p12 = pneg %p736_p11  ;;  %p533_p6 = por %p532_p7, %p531_p5 }
  0x16   : > { %p526_p0 = pnand %p524_p13, %p514_p12 }
  0x18   : > { %p527_p3 = pneg %p526_p0 }
  0x1a   : > { %p534_p4 = pnand %p533_p6, %p527_p3 }
  0x1c   : > { %537 = shalt.err (!%p534_p4)
}
  0x1d   : > { %s653_s27 = smov 256   ;;  %s654_s28 = smov 16  }
  0x1e   : > { %443 = dma.hbm_to_vmem [thread:$0]  (!%p736_p11), %s848_s1, 4096, %s132_s23, [#allocation6], %s653_s27, %s653_s27, %s654_s28  }
  0x1f   : > { %p29_p6 = scmp.ge.s32.totalorder %s28_s25, 2  ;;  %s38_s3 = sadd.s32 1, %s638_s11 }
  0x20   : > { %p45_p4 = scmp.ne.s32.totalorder %s638_s11, %s634_s10  ;;  %p46_p9 = scmp.eq.s32.totalorder %s650_s14, 0 }
  0x21   : > { %s869_s25 = smov (%p29_p6, %s28_s25), 0  ;;  %p453_p0 = scmp.lt.s32.totalorder %s650_s14, 2 }
  0x22   : > { %p754_p12 = por %p46_p9, %p45_p4  ;;  %p760_p13 = por %p711_p2, %p45_p4 }
  0x23   : > { %s35_s6 = ssub.s32 %s646_s13, %s869_s25  ;;  %s145_s7 = sand.u32 1, %s638_s11  }
  0x24   : > { %p36_p11 = scmp.eq.s32.totalorder %s35_s6, 0  ;;  %s421_s8 = sshll.u32 %s145_s7, 3 }
  0x25   : > { %s422_s16 = sshll.u32 %s646_s13, 7  ;;  %s149_s26 = scalar_lea.vmem [#allocation2], %s421_s8 }
  0x26   : > { %s769_s15 = scalar_select %p36_p11, %s638_s11, %s38_s3  }
  0x27   : > { %s154_s24 = scalar_lea.hbm %s847_s0, %s422_s16  ;;  %s156_s27 = sshll.u32 %s149_s26, 4  ;;  %s157_s27 = int_to_ptr.vmem [resolvable:$true] %s156_s27 }
  0x28   : > { %p777_p2 = pnand %p453_p0, %p754_p12  ;;  %s146_s28 = scalar_lea.sflag [#allocation3], %s145_s7 }
  0x29   : > { %s551_s29 = scalar_lea.vmem %s157_s27, 128  ;;  %s655_s30 = smov [#allocation2]  }
  0x2a   : > { %p540_p3 = pneg %p777_p2  ;;  %p552_p5 = scmp.ne.s32.totalorder %s157_s27, %s551_s29 }
  0x2b   : > { %s556_s3 = sshll.u32 %s655_s30, 4  ;;  %s557_s3 = int_to_ptr.vmem [resolvable:$false] %s556_s3 }
  0x2c   : > { %p554_p7 = pnand %p552_p5, %p540_p3  ;;  %s558_s6 = scalar_lea.vmem %s557_s3, 256 }
  0x2d   : > { %p559_p4 = scmp.lt.s32.totalorder %s157_s27, %s557_s3  ;;  %p560_p9 = scmp.lt.s32.totalorder %s558_s6, %s551_s29 }
  0x2e   : > { %p555_p6 = pneg %p554_p7 }
  0x2f   : > { %p561_p11 = por %p560_p9, %p559_p4 }
  0x31   : > { %p562_p10 = pnand %p561_p11, %p555_p6 }
  0x33   : > { %565 = shalt.err (!%p562_p10)
}
  0x34   : > { %447 = dma.hbm_to_vmem [thread:$0]  (!%p777_p2), %s154_s24, 128, %s157_s27, %s146_s28  }
  0x35   : > { %165 = sbr.rel (%p727_p8) target bundleno = 338 (0x152), region = 28  ;;  %s788_s4 = sand.u32 (!%p727_p8), 1, %s634_s10  }
  0x36   : > { %s424_s7 = sshll.u32 (!%p727_p8), %s788_s4, 3  ;;  %s168_s8 = scalar_lea.sflag (!%p727_p8), [#allocation3], %s788_s4 }
  0x37   : > { %s794_s16 = scalar_lea.vmem (!%p727_p8), [#allocation2], %s424_s7  ;;  %p860_p12 = scmp.ne.s32.totalorder (!%p727_p8), %s853_s19, 0 }
  0x3a   : > { %617 = dma.done.wait (%p860_p12), %s168_s8, 128  }
  0x3b   : > { %619 = vsyncadd (%p860_p12), %s168_s8, 4294967168 }
  0x3c   : > { %621 = dma.done.wait (%p707_p1), [#allocation6], 4096  }
  0x3d   : > { %623 = vsyncadd (%p707_p1), [#allocation6], 4294963200  ;;  %v656_v0 = vmov 0.0   ;;  %v229_v1 = vld [vmem:[#allocation5 + $0xf8] sm:$0xff]  ;;  %v228_v2 = vld [vmem:[#allocation5 + $0xf0] sm:$0xff]  ;;  %s429_s17 = sshll.u32 %s642_s12, 7 }
  0x3e   : > { %294 = vmatprep.mubr.f32.mxu0 %v656_v0  ;;  %v227_v3 = vld [vmem:[#allocation5 + $0xe8] sm:$0xff]  ;;  %230 = vmatprep.subr.mxu0 %v229_v1  ;;  %v226_v4 = vld [vmem:[#allocation5 + $0xe0] sm:$0xff]  ;;  %v225_v5 = vld [vmem:[#allocation5 + $0xd8] sm:$0xff]  ;;  %s195_s19 = scalar_lea.vmem [#allocation7], %s424_s7  ;;  %s323_s24 = scalar_lea.hbm %s849_s2, %s429_s17 }
  0x3f   : > { %231 = vmatpush1.msra.mxu0 %v228_v2  ;;  %v224_v6 = vld [vmem:[#allocation5 + $0xd0] sm:$0xff]  ;;  %v223_v7 = vld [vmem:[#allocation5 + $0xc8] sm:$0xff]  ;;  %v222_v8 = vld [vmem:[#allocation5 + $0xc0] sm:$0xff]  ;;  %s325_s21 = sshll.u32 %s195_s19, 4  ;;  %s311_s26 = scalar_lea.sflag [#allocation4], %s788_s4  ;;  %s326_s21 = int_to_ptr.vmem [resolvable:$true] %s325_s21 }
  0x40   : > { %232 = vmatprep.subr.mxu0 %v227_v3  ;;  %v221_v9 = vld [vmem:[#allocation5 + $0xb8] sm:$0xff]  ;;  %v220_v10 = vld [vmem:[#allocation5 + $0xb0] sm:$0xff]  ;;  %v219_v11 = vld [vmem:[#allocation5 + $0xa8] sm:$0xff]  ;;  %s566_s27 = scalar_lea.vmem %s326_s21, 128  ;;  %s657_s18 = smov [#allocation7]  }
  0x41   : > { %233 = vmatpush1.msra.mxu0 %v226_v4  ;;  %v218_v12 = vld [vmem:[#allocation5 + $0xa0] sm:$0xff]  ;;  %v217_v13 = vld [vmem:[#allocation5 + $0x98] sm:$0xff]  ;;  %v216_v14 = vld [vmem:[#allocation5 + $0x90] sm:$0xff]  ;;  %p567_p1 = scmp.ne.s32.totalorder %s326_s21, %s566_s27  ;;  %s570_s28 = sshll.u32 %s657_s18, 4  ;;  %s571_s28 = int_to_ptr.vmem [resolvable:$false] %s570_s28 }
  0x42   : > { %234 = vmatprep.subr.mxu0 %v225_v5  ;;  %v215_v15 = vld [vmem:[#allocation5 + $0x88] sm:$0xff]  ;;  %v214_v16 = vld [vmem:[#allocation5 + $0x80] sm:$0xff]  ;;  %v213_v17 = vld [vmem:[#allocation5 + $0x78] sm:$0xff]  ;;  %s572_s12 = scalar_lea.vmem %s571_s28, 256  ;;  %p573_p0 = scmp.lt.s32.totalorder %s326_s21, %s571_s28 }
  0x43   : > { %235 = vmatpush1.msra.mxu0 %v224_v6  ;;  %v212_v18 = vld [vmem:[#allocation5 + $0x70] sm:$0xff]  ;;  %v211_v19 = vld [vmem:[#allocation5 + $0x68] sm:$0xff]  ;;  %v210_v20 = vld [vmem:[#allocation5 + $0x60] sm:$0xff]  ;;  %p568_p8 = pnand %p567_p1, %p760_p13  ;;  %p574_p2 = scmp.lt.s32.totalorder %s572_s12, %s566_s27 }
  0x44   : > { %236 = vmatprep.subr.mxu0 %v223_v7  ;;  %v209_v21 = vld [vmem:[#allocation5 + $0x58] sm:$0xff]  ;;  %v208_v22 = vld [vmem:[#allocation5 + $0x50] sm:$0xff]  ;;  %v207_v23 = vld [vmem:[#allocation5 + $0x48] sm:$0xff] }
  0x45   : > { %237 = vmatpush1.msra.mxu0 %v222_v8  ;;  %v206_v24 = vld [vmem:[#allocation5 + $0x40] sm:$0xff]  ;;  %v205_v25 = vld [vmem:[#allocation5 + $0x38] sm:$0xff]  ;;  %v204_v26 = vld [vmem:[#allocation5 + $0x30] sm:$0xff]  ;;  %p569_p10 = pneg %p568_p8  ;;  %p575_p3 = por %p574_p2, %p573_p0 }
  0x46   : > { %238 = vmatprep.subr.mxu0 %v221_v9  ;;  %v203_v27 = vld [vmem:[#allocation5 + $0x28] sm:$0xff]  ;;  %v202_v28 = vld [vmem:[#allocation5 + $0x20] sm:$0xff]  ;;  %v201_v29 = vld [vmem:[#allocation5 + $0x18] sm:$0xff] }
  0x47   : > { %239 = vmatpush1.msra.mxu0 %v220_v10  ;;  %v200_v30 = vld [vmem:[#allocation5 + $0x10] sm:$0xff]  ;;  %v199_v31 = vld [vmem:[#allocation5 + $0x8] sm:$0xff]  ;;  %v198_v32 = vld [vmem:[#allocation5] sm:$0xff]  ;;  %p576_p5 = pnand %p575_p3, %p569_p10 }
  0x48   : > { %240 = vmatprep.subr.mxu0 %v219_v11  ;;  %v197_v33 = vld [vmem:[%s794_s16] sm:$0xff] }
  0x49   : > { %241 = vmatpush1.msra.mxu0 %v218_v12 }
  0x4a   : > { %242 = vmatprep.subr.mxu0 %v217_v13 }
  0x4b   : > { %243 = vmatpush1.msra.mxu0 %v216_v14 }
  0x4c   : > { %244 = vmatprep.subr.mxu0 %v215_v15 }
  0x4d   : > { %245 = vmatpush1.msra.mxu0 %v214_v16 }
  0x4e   : > { %246 = vmatprep.subr.mxu0 %v213_v17 }
  0x4f   : > { %247 = vmatpush1.msra.mxu0 %v212_v18 }
  0x50   : > { %248 = vmatprep.subr.mxu0 %v211_v19 }
  0x51   : > { %249 = vmatpush1.msra.mxu0 %v210_v20 }
  0x52   : > { %250 = vmatprep.subr.mxu0 %v209_v21 }
  0x53   : > { %251 = vmatpush1.msra.mxu0 %v208_v22 }
  0x54   : > { %252 = vmatprep.subr.mxu0 %v207_v23 }
  0x55   : > { %253 = vmatpush1.msra.mxu0 %v206_v24 }
  0x56   : > { %254 = vmatprep.subr.mxu0 %v205_v25 }
  0x57   : > { %255 = vmatpush1.msra.mxu0 %v204_v26 }
  0x58   : > { %256 = vmatprep.subr.mxu0 %v203_v27 }
  0x59   : > { %257 = vmatpush1.msra.mxu0 %v202_v28 }
  0x5a   : > { %258 = vmatprep.subr.mxu0 %v201_v29 }
  0x5b   : > { %259 = vmatpush1.msra.mxu0 %v200_v30 }
  0x5c   : > { %260 = vmatprep.subr.mxu0 %v199_v31 }
  0x5d   : > { %261 = vmatpush1.msra.mxu0 %v198_v32 }
  0x5e   : > { %295 = vmatmul.mubr.f32.vlgmr.msra.gmra.mxu0 %v197_v33 }
 0x11e   : > { %v296_v34 = vpop.f32.mrf.mxu0 }
 0x120   : > { %v298_v35 = vpop.f32.mrf.mxu0 }
 0x121   : > { %v427_v36 = vmul.f32 -1.442695, %v298_v35 }
 0x123   : > { %508 = vpow2.f32 %v427_v36 }
 0x130   : > { %v509_v37 = vpop.eup %508 }
 0x131   : > { %v304_v38 = vadd.f32 1.0, %v509_v37 }
 0x133   : > { %510 = vrcp.f32 %v304_v38 }
 0x140   : > { %v511_v39 = vpop.eup %510 }
 0x141   : > { %v307_v40 = vmul.f32 %v511_v39, %v298_v35 }
 0x143   : > { %v308_v41 = vmul.f32 %v307_v40, %v296_v34 }
 0x145   : > { %309 = vst [vmem:[%s195_s19] sm:$0xff] %v308_v41 }
 0x146   : > { %579 = shalt.err (!%p576_p5)
}
 0x147   : > { %s580_s29 = scalar_lea.hbm %s323_s24, 128  ;;  %s584_s6 = scalar_lea.hbm %s849_s2, 256 }
 0x148   : > { %p581_p7 = scmp.ne.s32.totalorder %s323_s24, %s580_s29  ;;  %p585_p9 = scmp.lt.s32.totalorder %s323_s24, %s849_s2 }
 0x149   : > { %p586_p11 = scmp.lt.s32.totalorder %s584_s6, %s580_s29 }
 0x14a   : > { %p582_p6 = pnand %p581_p7, %p760_p13 }
 0x14b   : > { %p587_p12 = por %p586_p11, %p585_p9 }
 0x14c   : > { %p583_p4 = pneg %p582_p6 }
 0x14e   : > { %p588_p1 = pnand %p587_p12, %p583_p4 }
 0x150   : > { %591 = shalt.err (!%p588_p1)
}
 0x151   : > { %438 = dma.vmem_to_hbm [thread:$0]  (%p760_p13), %s326_s21, 128, %s323_s24, %s311_s26  }
 0x152 PF: > { %s337_s8 = sand.u32 1, %s630_s9   ;;  %p861_p8 = scmp.ne.s32.totalorder %s854_s20, 0 }
 0x153   : > { %p862_p10 = scmp.ge.s32.totalorder %s650_s14, 2  ;;  %s338_s16 = scalar_lea.sflag [#allocation4], %s337_s8 }
 0x155   : > { %p449_p0 = pnand %p862_p10, %p861_p8 }
 0x157   : > { %p450_p2 = pneg %p449_p0 }
 0x159   : > { %625 = dma.done.wait (%p450_p2), %s338_s16, 128  }
 0x15a   : > { %627 = vsyncadd (%p450_p2), %s338_s16, 4294967168  ;;  %s19_s14 = sadd.s32 1, %s650_s14   ;;  %s863_s9 = smov %s634_s10 }
 0x15b   : > { %p16_p3 = scmp.ge.s32.totalorder %s19_s14, 4   ;;  %s864_s10 = smov %s638_s11 }
 0x15c   : > { %s865_s11 = smov %s769_s15  ;;  %s866_s12 = smov %s646_s13 }
 0x15d   : > { %s867_s13 = smov %s869_s25  ;;  %18 = sbr.rel (!%p16_p3) target bundleno = 7 (0x7), region = 78 }
 0x162   :  { %343 = vsyncpa [#allocation3], 1 }
 0x163   :  { %345 = vsyncpa [#allocation3 + $0x1], 1 }
 0x164   :  { %346 = vsyncpa [#allocation6], 1 }
 0x165   :  { %347 = vsyncpa [#allocation4], 1 }
 0x166   :  { %349 = vsyncpa [#allocation4 + $0x1], 1 }

// kernel: tpu_custom_call.1
= control target key start
LH: loop header
LB: loop body
LE: loop exit
PB: predicated region body
PF: predicated region fallthrough
CT: control target
= control target key end

     0   :  { %7 = vsyncpa [#allocation3], 0  ;;  %s847_s0 = inlined_call_operand.hbm [shape: f32[16,128], index: 0, kind: input, shape index: {}]   ;;  %s848_s1 = inlined_call_operand.hbm [shape: f32[128,256], index: 1, kind: input, shape index: {}]   ;;  %s849_s2 = inlined_call_operand.hbm [shape: f32[16,128], index: 2, kind: output, shape index: {}]  }
   0x1   :  { %9 = vsyncpa [#allocation3 + $0x1], 0 }
   0x2   :  { %10 = vsyncpa [#allocation6], 0 }
   0x3   :  { %11 = vsyncpa [#allocation4], 0 }
   0x4   :  { %13 = vsyncpa [#allocation4 + $0x1], 0  ;;  %s673_s9 = smov 0   ;;  %s675_s10 = smov 0  }
   0x5   :  { %s677_s11 = smov 0   ;;  %s679_s12 = smov 0  }
   0x6   :  { %s681_s13 = smov 0   ;;  %s683_s14 = smov 0  }
   0x7 LB: > { %s416_s15 = sadd.s32 4294967295, %s650_s14   ;;  %s417_s16 = sadd.s32 4294967294, %s650_s14   ;;  %s650_s14 = sphi %s683_s14, %s19_s14   ;;  %s646_s13 = sphi %s681_s13, %s867_s13   ;;  %s642_s12 = sphi %s679_s12, %s866_s12   ;;  %s638_s11 = sphi %s677_s11, %s865_s11   ;;  %s634_s10 = sphi %s675_s10, %s864_s10   ;;  %s630_s9 = sphi %s673_s9, %s863_s9  }
   0x8   : > { %p51_p0 = scmp.ne.s32.totalorder %s634_s10, %s630_s9  ;;  %p707_p1 = scmp.eq.s32.totalorder %s416_s15, 0 }
   0x9   : > { %p711_p2 = scmp.eq.s32.totalorder %s416_s15, 1  ;;  %p109_p3 = scmp.eq.s32.totalorder %s417_s16, 1 }
   0xa   : > { %p717_p4 = por %p707_p1, %p51_p0  ;;  %p418_p5 = scmp.ge.s32.totalorder %s650_s14, 1 }
   0xb   : > { %p722_p6 = por %p109_p3, %p51_p0  ;;  %p116_p7 = scmp.lt.s32.totalorder %s650_s14, 3 }
   0xc   : > { %s853_s19 = scalar_select %p717_p4, 1, 0 }
   0xd   : > { %s854_s20 = scalar_select %p722_p6, 1, 0 }
   0xe   : > { %p727_p8 = pnand %p418_p5, %p116_p7  ;;  %s652_s22 = smov [#allocation5]  }
   0xf   : > { %s131_s23 = sshll.u32 %s652_s22, 4  ;;  %s28_s25 = sadd.s32 1, %s646_s13  ;;  %s132_s23 = int_to_ptr.vmem [resolvable:$true] %s131_s23 }
  0x10   : > { %p440_p9 = pneg %p727_p8  ;;  %s523_s26 = scalar_lea.vmem %s132_s23, 4096 }
  0x11   : > { %p524_p13 = scmp.ne.s32.totalorder %s132_s23, %s523_s26  ;;  %p531_p5 = scmp.lt.s32.totalorder %s132_s23, %s132_s23 }
  0x12   : > { %p736_p11 = pnand %p440_p9, %p707_p1  ;;  %p532_p7 = scmp.lt.s32.totalorder %s523_s26, %s523_s26 }
  0x14   : > { %p514_p12 = pneg %p736_p11  ;;  %p533_p6 = por %p532_p7, %p531_p5 }
  0x16   : > { %p526_p0 = pnand %p524_p13, %p514_p12 }
  0x18   : > { %p527_p3 = pneg %p526_p0 }
  0x1a   : > { %p534_p4 = pnand %p533_p6, %p527_p3 }
  0x1c   : > { %537 = shalt.err (!%p534_p4)
}
  0x1d   : > { %s653_s27 = smov 256   ;;  %s654_s28 = smov 16  }
  0x1e   : > { %443 = dma.hbm_to_vmem [thread:$0]  (!%p736_p11), %s848_s1, 4096, %s132_s23, [#allocation6], %s653_s27, %s653_s27, %s654_s28  }
  0x1f   : > { %p29_p6 = scmp.ge.s32.totalorder %s28_s25, 2  ;;  %s38_s3 = sadd.s32 1, %s638_s11 }
  0x20   : > { %p45_p4 = scmp.ne.s32.totalorder %s638_s11, %s634_s10  ;;  %p46_p9 = scmp.eq.s32.totalorder %s650_s14, 0 }
  0x21   : > { %s869_s25 = smov (%p29_p6, %s28_s25), 0  ;;  %p453_p0 = scmp.lt.s32.totalorder %s650_s14, 2 }
  0x22   : > { %p754_p12 = por %p46_p9, %p45_p4  ;;  %p760_p13 = por %p711_p2, %p45_p4 }
  0x23   : > { %s35_s6 = ssub.s32 %s646_s13, %s869_s25  ;;  %s145_s7 = sand.u32 1, %s638_s11  }
  0x24   : > { %p36_p11 = scmp.eq.s32.totalorder %s35_s6, 0  ;;  %s421_s8 = sshll.u32 %s145_s7, 3 }
  0x25   : > { %s422_s16 = sshll.u32 %s646_s13, 7  ;;  %s149_s26 = scalar_lea.vmem [#allocation2], %s421_s8 }
  0x26   : > { %s769_s15 = scalar_select %p36_p11, %s638_s11, %s38_s3  }
  0x27   : > { %s154_s24 = scalar_lea.hbm %s847_s0, %s422_s16  ;;  %s156_s27 = sshll.u32 %s149_s26, 4  ;;  %s157_s27 = int_to_ptr.vmem [resolvable:$true] %s156_s27 }
  0x28   : > { %p777_p2 = pnand %p453_p0, %p754_p12  ;;  %s146_s28 = scalar_lea.sflag [#allocation3], %s145_s7 }
  0x29   : > { %s551_s29 = scalar_lea.vmem %s157_s27, 128  ;;  %s655_s30 = smov [#allocation2]  }
  0x2a   : > { %p540_p3 = pneg %p777_p2  ;;  %p552_p5 = scmp.ne.s32.totalorder %s157_s27, %s551_s29 }
  0x2b   : > { %s556_s3 = sshll.u32 %s655_s30, 4  ;;  %s557_s3 = int_to_ptr.vmem [resolvable:$false] %s556_s3 }
  0x2c   : > { %p554_p7 = pnand %p552_p5, %p540_p3  ;;  %s558_s6 = scalar_lea.vmem %s557_s3, 256 }
  0x2d   : > { %p559_p4 = scmp.lt.s32.totalorder %s157_s27, %s557_s3  ;;  %p560_p9 = scmp.lt.s32.totalorder %s558_s6, %s551_s29 }
  0x2e   : > { %p555_p6 = pneg %p554_p7 }
  0x2f   : > { %p561_p11 = por %p560_p9, %p559_p4 }
  0x31   : > { %p562_p10 = pnand %p561_p11, %p555_p6 }
  0x33   : > { %565 = shalt.err (!%p562_p10)
}
  0x34   : > { %447 = dma.hbm_to_vmem [thread:$0]  (!%p777_p2), %s154_s24, 128, %s157_s27, %s146_s28  }
  0x35   : > { %165 = sbr.rel (%p727_p8) target bundleno = 338 (0x152), region = 28  ;;  %s788_s4 = sand.u32 (!%p727_p8), 1, %s634_s10  }
  0x36   : > { %s424_s7 = sshll.u32 (!%p727_p8), %s788_s4, 3  ;;  %s168_s8 = scalar_lea.sflag (!%p727_p8), [#allocation3], %s788_s4 }
  0x37   : > { %s794_s16 = scalar_lea.vmem (!%p727_p8), [#allocation2], %s424_s7  ;;  %p860_p12 = scmp.ne.s32.totalorder (!%p727_p8), %s853_s19, 0 }
  0x3a   : > { %617 = dma.done.wait (%p860_p12), %s168_s8, 128  }
  0x3b   : > { %619 = vsyncadd (%p860_p12), %s168_s8, 4294967168 }
  0x3c   : > { %621 = dma.done.wait (%p707_p1), [#allocation6], 4096  }
  0x3d   : > { %623 = vsyncadd (%p707_p1), [#allocation6], 4294963200  ;;  %v656_v0 = vmov 0.0   ;;  %v229_v1 = vld [vmem:[#allocation5 + $0xf8] sm:$0xff]  ;;  %v228_v2 = vld [vmem:[#allocation5 + $0xf0] sm:$0xff]  ;;  %s429_s17 = sshll.u32 %s642_s12, 7 }
  0x3e   : > { %294 = vmatprep.mubr.f32.mxu0 %v656_v0  ;;  %v227_v3 = vld [vmem:[#allocation5 + $0xe8] sm:$0xff]  ;;  %230 = vmatprep.subr.mxu0 %v229_v1  ;;  %v226_v4 = vld [vmem:[#allocation5 + $0xe0] sm:$0xff]  ;;  %v225_v5 = vld [vmem:[#allocation5 + $0xd8] sm:$0xff]  ;;  %s195_s19 = scalar_lea.vmem [#allocation7], %s424_s7  ;;  %s323_s24 = scalar_lea.hbm %s849_s2, %s429_s17 }
  0x3f   : > { %231 = vmatpush1.msra.mxu0 %v228_v2  ;;  %v224_v6 = vld [vmem:[#allocation5 + $0xd0] sm:$0xff]  ;;  %v223_v7 = vld [vmem:[#allocation5 + $0xc8] sm:$0xff]  ;;  %v222_v8 = vld [vmem:[#allocation5 + $0xc0] sm:$0xff]  ;;  %s325_s21 = sshll.u32 %s195_s19, 4  ;;  %s311_s26 = scalar_lea.sflag [#allocation4], %s788_s4  ;;  %s326_s21 = int_to_ptr.vmem [resolvable:$true] %s325_s21 }
  0x40   : > { %232 = vmatprep.subr.mxu0 %v227_v3  ;;  %v221_v9 = vld [vmem:[#allocation5 + $0xb8] sm:$0xff]  ;;  %v220_v10 = vld [vmem:[#allocation5 + $0xb0] sm:$0xff]  ;;  %v219_v11 = vld [vmem:[#allocation5 + $0xa8] sm:$0xff]  ;;  %s566_s27 = scalar_lea.vmem %s326_s21, 128  ;;  %s657_s18 = smov [#allocation7]  }
  0x41   : > { %233 = vmatpush1.msra.mxu0 %v226_v4  ;;  %v218_v12 = vld [vmem:[#allocation5 + $0xa0] sm:$0xff]  ;;  %v217_v13 = vld [vmem:[#allocation5 + $0x98] sm:$0xff]  ;;  %v216_v14 = vld [vmem:[#allocation5 + $0x90] sm:$0xff]  ;;  %p567_p1 = scmp.ne.s32.totalorder %s326_s21, %s566_s27  ;;  %s570_s28 = sshll.u32 %s657_s18, 4  ;;  %s571_s28 = int_to_ptr.vmem [resolvable:$false] %s570_s28 }
  0x42   : > { %234 = vmatprep.subr.mxu0 %v225_v5  ;;  %v215_v15 = vld [vmem:[#allocation5 + $0x88] sm:$0xff]  ;;  %v214_v16 = vld [vmem:[#allocation5 + $0x80] sm:$0xff]  ;;  %v213_v17 = vld [vmem:[#allocation5 + $0x78] sm:$0xff]  ;;  %s572_s12 = scalar_lea.vmem %s571_s28, 256  ;;  %p573_p0 = scmp.lt.s32.totalorder %s326_s21, %s571_s28 }
  0x43   : > { %235 = vmatpush1.msra.mxu0 %v224_v6  ;;  %v212_v18 = vld [vmem:[#allocation5 + $0x70] sm:$0xff]  ;;  %v211_v19 = vld [vmem:[#allocation5 + $0x68] sm:$0xff]  ;;  %v210_v20 = vld [vmem:[#allocation5 + $0x60] sm:$0xff]  ;;  %p568_p8 = pnand %p567_p1, %p760_p13  ;;  %p574_p2 = scmp.lt.s32.totalorder %s572_s12, %s566_s27 }
  0x44   : > { %236 = vmatprep.subr.mxu0 %v223_v7  ;;  %v209_v21 = vld [vmem:[#allocation5 + $0x58] sm:$0xff]  ;;  %v208_v22 = vld [vmem:[#allocation5 + $0x50] sm:$0xff]  ;;  %v207_v23 = vld [vmem:[#allocation5 + $0x48] sm:$0xff] }
  0x45   : > { %237 = vmatpush1.msra.mxu0 %v222_v8  ;;  %v206_v24 = vld [vmem:[#allocation5 + $0x40] sm:$0xff]  ;;  %v205_v25 = vld [vmem:[#allocation5 + $0x38] sm:$0xff]  ;;  %v204_v26 = vld [vmem:[#allocation5 + $0x30] sm:$0xff]  ;;  %p569_p10 = pneg %p568_p8  ;;  %p575_p3 = por %p574_p2, %p573_p0 }
  0x46   : > { %238 = vmatprep.subr.mxu0 %v221_v9  ;;  %v203_v27 = vld [vmem:[#allocation5 + $0x28] sm:$0xff]  ;;  %v202_v28 = vld [vmem:[#allocation5 + $0x20] sm:$0xff]  ;;  %v201_v29 = vld [vmem:[#allocation5 + $0x18] sm:$0xff] }
  0x47   : > { %239 = vmatpush1.msra.mxu0 %v220_v10  ;;  %v200_v30 = vld [vmem:[#allocation5 + $0x10] sm:$0xff]  ;;  %v199_v31 = vld [vmem:[#allocation5 + $0x8] sm:$0xff]  ;;  %v198_v32 = vld [vmem:[#allocation5] sm:$0xff]  ;;  %p576_p5 = pnand %p575_p3, %p569_p10 }
  0x48   : > { %240 = vmatprep.subr.mxu0 %v219_v11  ;;  %v197_v33 = vld [vmem:[%s794_s16] sm:$0xff] }
  0x49   : > { %241 = vmatpush1.msra.mxu0 %v218_v12 }
  0x4a   : > { %242 = vmatprep.subr.mxu0 %v217_v13 }
  0x4b   : > { %243 = vmatpush1.msra.mxu0 %v216_v14 }
  0x4c   : > { %244 = vmatprep.subr.mxu0 %v215_v15 }
  0x4d   : > { %245 = vmatpush1.msra.mxu0 %v214_v16 }
  0x4e   : > { %246 = vmatprep.subr.mxu0 %v213_v17 }
  0x4f   : > { %247 = vmatpush1.msra.mxu0 %v212_v18 }
  0x50   : > { %248 = vmatprep.subr.mxu0 %v211_v19 }
  0x51   : > { %249 = vmatpush1.msra.mxu0 %v210_v20 }
  0x52   : > { %250 = vmatprep.subr.mxu0 %v209_v21 }
  0x53   : > { %251 = vmatpush1.msra.mxu0 %v208_v22 }
  0x54   : > { %252 = vmatprep.subr.mxu0 %v207_v23 }
  0x55   : > { %253 = vmatpush1.msra.mxu0 %v206_v24 }
  0x56   : > { %254 = vmatprep.subr.mxu0 %v205_v25 }
  0x57   : > { %255 = vmatpush1.msra.mxu0 %v204_v26 }
  0x58   : > { %256 = vmatprep.subr.mxu0 %v203_v27 }
  0x59   : > { %257 = vmatpush1.msra.mxu0 %v202_v28 }
  0x5a   : > { %258 = vmatprep.subr.mxu0 %v201_v29 }
  0x5b   : > { %259 = vmatpush1.msra.mxu0 %v200_v30 }
  0x5c   : > { %260 = vmatprep.subr.mxu0 %v199_v31 }
  0x5d   : > { %261 = vmatpush1.msra.mxu0 %v198_v32 }
  0x5e   : > { %295 = vmatmul.mubr.f32.vlgmr.msra.gmra.mxu0 %v197_v33 }
 0x11e   : > { %v296_v34 = vpop.f32.mrf.mxu0 }
 0x120   : > { %v298_v35 = vpop.f32.mrf.mxu0 }
 0x121   : > { %v427_v36 = vmul.f32 -1.442695, %v298_v35 }
 0x123   : > { %508 = vpow2.f32 %v427_v36 }
 0x130   : > { %v509_v37 = vpop.eup %508 }
 0x131   : > { %v304_v38 = vadd.f32 1.0, %v509_v37 }
 0x133   : > { %510 = vrcp.f32 %v304_v38 }
 0x140   : > { %v511_v39 = vpop.eup %510 }
 0x141   : > { %v307_v40 = vmul.f32 %v511_v39, %v298_v35 }
 0x143   : > { %v308_v41 = vmul.f32 %v307_v40, %v296_v34 }
 0x145   : > { %309 = vst [vmem:[%s195_s19] sm:$0xff] %v308_v41 }
 0x146   : > { %579 = shalt.err (!%p576_p5)
}
 0x147   : > { %s580_s29 = scalar_lea.hbm %s323_s24, 128  ;;  %s584_s6 = scalar_lea.hbm %s849_s2, 256 }
 0x148   : > { %p581_p7 = scmp.ne.s32.totalorder %s323_s24, %s580_s29  ;;  %p585_p9 = scmp.lt.s32.totalorder %s323_s24, %s849_s2 }
 0x149   : > { %p586_p11 = scmp.lt.s32.totalorder %s584_s6, %s580_s29 }
 0x14a   : > { %p582_p6 = pnand %p581_p7, %p760_p13 }
 0x14b   : > { %p587_p12 = por %p586_p11, %p585_p9 }
 0x14c   : > { %p583_p4 = pneg %p582_p6 }
 0x14e   : > { %p588_p1 = pnand %p587_p12, %p583_p4 }
 0x150   : > { %591 = shalt.err (!%p588_p1)
}
 0x151   : > { %438 = dma.vmem_to_hbm [thread:$0]  (%p760_p13), %s326_s21, 128, %s323_s24, %s311_s26  }
 0x152 PF: > { %s337_s8 = sand.u32 1, %s630_s9   ;;  %p861_p8 = scmp.ne.s32.totalorder %s854_s20, 0 }
 0x153   : > { %p862_p10 = scmp.ge.s32.totalorder %s650_s14, 2  ;;  %s338_s16 = scalar_lea.sflag [#allocation4], %s337_s8 }
 0x155   : > { %p449_p0 = pnand %p862_p10, %p861_p8 }
 0x157   : > { %p450_p2 = pneg %p449_p0 }
 0x159   : > { %625 = dma.done.wait (%p450_p2), %s338_s16, 128  }
 0x15a   : > { %627 = vsyncadd (%p450_p2), %s338_s16, 4294967168  ;;  %s19_s14 = sadd.s32 1, %s650_s14   ;;  %s863_s9 = smov %s634_s10 }
 0x15b   : > { %p16_p3 = scmp.ge.s32.totalorder %s19_s14, 4   ;;  %s864_s10 = smov %s638_s11 }
 0x15c   : > { %s865_s11 = smov %s769_s15  ;;  %s866_s12 = smov %s646_s13 }
 0x15d   : > { %s867_s13 = smov %s869_s25  ;;  %18 = sbr.rel (!%p16_p3) target bundleno = 7 (0x7), region = 78 }
 0x162   :  { %343 = vsyncpa [#allocation3], 1 }
 0x163   :  { %345 = vsyncpa [#allocation3 + $0x1], 1 }
 0x164   :  { %346 = vsyncpa [#allocation6], 1 }
 0x165   :  { %347 = vsyncpa [#allocation4], 1 }
 0x166   :  { %349 = vsyncpa [#allocation4 + $0x1], 1 }

</bundles_post_ra>
